<compile_context>
chip_gen: v6e
topology: v6e:2x2x1
jax: 0.10.0
libtpu: 0.0.40
codegen_flags: <defaults>
</compile_context>

<pallas_src>
import jax
import jax.numpy as jnp
from jax.experimental import pallas as pl
from jax.experimental.pallas import tpu as pltpu

_LANES = 128                       # vreg lane width
_TARGET_BLOCK_BYTES = 4 * 1024 * 1024   # ~4 MiB per block (safe on v7x 64 MiB VMEM)


def _copy_kernel(x_ref, o_ref):
    # Whole-tile VMEM load + store (pure pass-through).
    o_ref[...] = x_ref[...]


def _lane_dense_copy(x2: jnp.ndarray) -> jnp.ndarray:
    """Identity copy of a lane-dense 2D view (rows, 128)."""
    R, L = x2.shape
    itemsize = jnp.dtype(x2.dtype).itemsize
    # Rows per block: ~4 MiB worth, multiple of 8 sublanes.
    max_rows = max(8, ((_TARGET_BLOCK_BYTES // (L * itemsize)) // 8) * 8)
    if R <= max_rows:
        tr = R            # single full-array block (full dims are always legal)
        grid = (1,)
    else:
        tr = max_rows     # multiple of 8; partial last block handled by Pallas
        grid = (pl.cdiv(R, tr),)

    return pl.pallas_call(
        _copy_kernel,
        out_shape=jax.ShapeDtypeStruct((R, L), x2.dtype),
        grid=grid,
        in_specs=[pl.BlockSpec((tr, L), lambda i: (i, 0))],
        out_specs=pl.BlockSpec((tr, L), lambda i: (i, 0)),
        # Identity: alias output onto the input buffer -> no extra HBM output.
        input_output_aliases={0: 0},
        compiler_params=pltpu.CompilerParams(
            dimension_semantics=("parallel",)),
    )(x2)


def _full_block_copy(x: jnp.ndarray) -> jnp.ndarray:
    """Fallback for shapes whose element count is not a multiple of 128:
    a single full-array block (full dims satisfy the tiling constraint)."""
    ndim = x.ndim
    return pl.pallas_call(
        _copy_kernel,
        out_shape=jax.ShapeDtypeStruct(x.shape, x.dtype),
        grid=(1,),
        in_specs=[pl.BlockSpec(x.shape, lambda i: (0,) * ndim)],
        out_specs=pl.BlockSpec(x.shape, lambda i: (0,) * ndim),
        input_output_aliases={0: 0},
    )(x)


def base_model_forward(x: jnp.ndarray,
                       input_sequence_length: int,
                       output_sequence_length: int,
                       num_features: int) -> jnp.ndarray:
    """Pallas pass-through respecting the BaseModel tensor contract.

    x: [B, input_sequence_length, num_features]
    returns: identical tensor (the abstract base class defines no transform).
    """
    B, S, F = x.shape
    assert S == input_sequence_length and F == num_features

    n = B * S * F
    if n % _LANES == 0:
        # Lane-dense view: every store is a full 128-lane store.
        y2 = _lane_dense_copy(x.reshape(n // _LANES, _LANES))
        return y2.reshape(B, S, F)
    return _full_block_copy(x)


if __name__ == "__main__":
    # Shapes implied by the module's __init__:
    B = 2
    input_sequence_length = 8
    output_sequence_length = 4
    num_features = 32

    key = jax.random.PRNGKey(0)
    x = jax.random.normal(
        key, (B, input_sequence_length, num_features), dtype=jnp.float32)
    # Snapshot the reference on host (safe regardless of buffer aliasing).
    x_host = jax.device_get(x)

    y = base_model_forward(
        x, input_sequence_length, output_sequence_length, num_features)
    y = jax.block_until_ready(y)

    assert y.shape == (B, input_sequence_length, num_features)
    assert jnp.allclose(jax.device_get(y), x_host)
    print("KERNEL_OK")
</pallas_src>

<mosaic_0001>
module attributes {stable_mosaic.version = 11 : i64} {
  func.func @_copy_kernel(%arg0: i32, %arg1: memref<4x128xf32, #tpu.memory_space<vmem>>, %arg2: memref<4x128xf32, #tpu.memory_space<vmem>>) attributes {dimension_semantics = [#tpu.dimension_semantics<parallel>], iteration_bounds = array<i64: 1>, scalar_prefetch = 0 : i64, scratch_operands = 0 : i64, tpu.core_type = #tpu.core_type<tc>, window_params = [{transform_indices = @transform_0, window_bounds = array<i64: 4, 128>}, {transform_indices = @transform_1, window_bounds = array<i64: 4, 128>}]} {
    %c0 = arith.constant 0 : index
    %c0_0 = arith.constant 0 : index
    %0 = vector.load %arg1[%c0, %c0_0] : memref<4x128xf32, #tpu.memory_space<vmem>>, vector<4x128xf32>
    %c0_1 = arith.constant 0 : index
    %c0_2 = arith.constant 0 : index
    %1 = vector.load %arg2[%c0_1, %c0_2] : memref<4x128xf32, #tpu.memory_space<vmem>>, vector<4x128xf32>
    tpu.vector_store %arg2[%c0_1, %c0_2], %0 {strides = array<i32>} : memref<4x128xf32, #tpu.memory_space<vmem>>, vector<4x128xf32>,
    return
  }
  func.func @transform_0(%arg0: i32) -> (i32, i32) {
    %c0_i32 = arith.constant 0 : i32
    %c0_i32_0 = arith.constant 0 : i32
    return %arg0, %c0_i32 : i32, i32
  }
  func.func @transform_1(%arg0: i32) -> (i32, i32) {
    %c0_i32 = arith.constant 0 : i32
    %c0_i32_0 = arith.constant 0 : i32
    return %arg0, %c0_i32 : i32, i32
  }
}

</mosaic_0001>

<bundles_post_ra>
// kernel: tpu_custom_call.1
= control target key start
LH: loop header
LB: loop body
LE: loop exit
PB: predicated region body
PF: predicated region fallthrough
CT: control target
= control target key end

     0   :  { %6 = vsyncpa [#allocation3], 0  ;;  %s102_s0 = inlined_call_operand.hbm [shape: f32[4,128], index: 0, kind: input, shape index: {}, may-alias: {0,1}]   ;;  %s103_s1 = inlined_call_operand.hbm [shape: f32[4,128], index: 1, kind: output, shape index: {}, may-alias: {0,1}]  }
   0x1   :  { %7 = vsyncpa [#allocation4], 0  ;;  %s84_s6 = smov [#allocation2]  }
   0x2   :  { %s14_s7 = sshll.u32 %s84_s6, 4  ;;  %s15_s7 = int_to_ptr.vmem [resolvable:$true] %s14_s7 }
   0x3   :  { %s48_s8 = scalar_lea.vmem %s15_s7, 64  ;;  %p53_p1 = scmp.lt.s32.totalorder %s15_s7, %s15_s7 }
   0x4   :  { %p49_p0 = scmp.ne.s32.totalorder %s15_s7, %s48_s8  ;;  %p54_p2 = scmp.lt.s32.totalorder %s48_s8, %s48_s8 }
   0x6   :  { %p55_p3 = por %p54_p2, %p53_p1 }
   0x8   :  { %p56_p4 = pnand %p55_p3, %p49_p0 }
   0xa   :  { %59 = shalt.err (!%p56_p4)
}
   0xb   :  { %17 = dma.hbm_to_vmem [thread:$0]  %s102_s0, 64, %s15_s7, [#allocation3]  }
   0xc   :  { %80 = dma.done.wait [#allocation3], 64  }
   0xd   :  { %81 = vsyncadd [#allocation3], 4294967232  ;;  %s85_s11 = smov [#allocation5]   ;;  %v21_v0 = vld [vmem:[#allocation2] sm:$0xf] }
   0xe   :  { %s29_s12 = sshll.u32 %s85_s11, 4  ;;  %22 = vst [vmem:[#allocation5] sm:$0xf] %v21_v0  ;;  %s30_s12 = int_to_ptr.vmem [resolvable:$true] %s29_s12 }
   0xf   :  { %s60_s13 = scalar_lea.vmem %s30_s12, 64  ;;  %p65_p6 = scmp.lt.s32.totalorder %s30_s12, %s30_s12 }
  0x10   :  { %p61_p5 = scmp.ne.s32.totalorder %s30_s12, %s60_s13  ;;  %p66_p7 = scmp.lt.s32.totalorder %s60_s13, %s60_s13 }
  0x12   :  { %p67_p8 = por %p66_p7, %p65_p6 }
  0x14   :  { %p68_p9 = pnand %p67_p8, %p61_p5 }
  0x16   :  { %71 = shalt.err (!%p68_p9)
}
  0x17   :  { %32 = dma.vmem_to_hbm [thread:$0]  %s30_s12, 64, %s103_s1, [#allocation4]  }
  0x18   :  { %82 = dma.done.wait [#allocation4], 64  }
  0x19   :  { %83 = vsyncadd [#allocation4], 4294967232 }
  0x1a   :  { %36 = vsyncpa [#allocation3], 1 }
  0x1b   :  { %37 = vsyncpa [#allocation4], 1 }

</bundles_post_ra>
